<compile_context>
chip_gen: v5e
topology: v5e:2x2
jax: 0.10.0
libtpu: 0.0.40
codegen_flags: <defaults>
</compile_context>

<pallas_src>
import numpy as np
import jax
import jax.numpy as jnp
from jax.experimental import pallas as pl
from jax.experimental.pallas import tpu as pltpu

# ----------------------------- module config --------------------------------
N_LEVELS = 16
F_PER_LEVEL = 2
LOG2_HASHMAP = 19
BASE_RES = 16
FINE_RES = 2048
N_NEURONS = 64
DIM_IN = N_LEVELS * F_PER_LEVEL + 3          # 35 = 3 dirs + 16 levels * 2 feats
MAX_TM = 2048                                # rows (lanes) per grid step, upper bound

HASH_PRIMES = (1, 2654435761, 805459861)

# corner-bit table for the 8 trilinear corners, bit d = ((corner >> d) & 1)
CORNER_BITS = np.array([[(c >> d) & 1 for d in range(3)] for c in range(8)],
                       dtype=np.uint32)                       # (8, 3)


# ----------------------------- Pallas kernel ---------------------------------
def sdf_mlp_kernel(x_ref, w1_ref, b1_ref, w2_ref, b2_ref, w3_ref, b3_ref, o_ref):
    # Feature-major: x_ref is (DIM_IN, TM) bf16 with the batch dim on lanes.
    x = x_ref[...]
    h = jnp.dot(w1_ref[...], x, preferred_element_type=jnp.float32) + b1_ref[...]
    h = jnp.maximum(h, 0.0).astype(jnp.bfloat16)              # ReLU, (64, TM)
    h = jnp.dot(w2_ref[...], h, preferred_element_type=jnp.float32) + b2_ref[...]
    h = jnp.maximum(h, 0.0).astype(jnp.bfloat16)              # ReLU, (64, TM)
    # Final layer: only one output row is live; batch stays on lanes -> no transpose.
    y8 = jnp.dot(w3_ref[...], h, preferred_element_type=jnp.float32)   # (8, TM)
    y = y8[0:1, :] + b3_ref[0]            # (1, TM); forward's "+1.0" folded into b3
    # softplus with PyTorch semantics (beta=1, threshold=20), live row only
    sp = jnp.where(y > 20.0, y, jnp.log1p(jnp.exp(jnp.minimum(y, 20.0))))
    o_ref[...] = sp                                            # (1, TM) lane-dense store


def _choose_tm(n):
    """Big tiles to amortize per-step overhead, but keep >= 4 grid steps when
    possible (>= 2 per TensorCore on v7x) so the pipeline has work to overlap."""
    tm = MAX_TM
    while tm > 512 and pl.cdiv(n, tm) < 4:
        tm //= 2
    while tm > 128 and pl.cdiv(n, tm) < 2:
        tm //= 2
    return tm


def geo_mlp_pallas(x_cat_t, params):
    """x_cat_t: (DIM_IN, N) bf16, feature-major -> (N,) f32 distance (softplus applied)."""
    w1t, b1, w2t, b2, w3_row, b3 = params
    n = x_cat_t.shape[1]
    tm = _choose_tm(n)
    grid_m = pl.cdiv(n, tm)        # partial final block over-reads; stores are masked

    out = pl.pallas_call(
        sdf_mlp_kernel,
        out_shape=jax.ShapeDtypeStruct((1, n), jnp.float32),
        grid=(grid_m,),
        in_specs=[
            pl.BlockSpec((DIM_IN, tm), lambda i: (0, i)),            # x tile (feature-major)
            pl.BlockSpec((N_NEURONS, DIM_IN), lambda i: (0, 0)),     # w1^T (VMEM-resident)
            pl.BlockSpec((N_NEURONS, 1), lambda i: (0, 0)),          # b1
            pl.BlockSpec((N_NEURONS, N_NEURONS), lambda i: (0, 0)),  # w2^T
            pl.BlockSpec((N_NEURONS, 1), lambda i: (0, 0)),          # b2
            pl.BlockSpec((8, N_NEURONS), lambda i: (0, 0)),          # w3 rows (row 0 live)
            pl.BlockSpec(memory_space=pltpu.MemorySpace.SMEM),       # b3 scalar
        ],
        out_specs=pl.BlockSpec((1, tm), lambda i: (0, i)),           # lane-dense output
        compiler_params=pltpu.CompilerParams(dimension_semantics=("parallel",)),
    )(x_cat_t, w1t, b1, w2t, b2, w3_row, b3)
    return out[0]


# --------------------- hash-grid encoding (plain JAX glue) --------------------
# TODO(synk): the data-dependent multi-level hash-table gather (~48 MB of
# tables, per-point indices) stays in plain JAX; a follow-up Pallas gather
# kernel fused with the transposed x_cat emission (tables VMEM-resident on
# v5e/v6e, dense+low levels resident / rest streamed on v7x's 64 MiB) is the
# next structural win but is not expressible with a BlockSpec.
def init_hash_tables(key):
    per_level_scale = float(np.exp(np.log(FINE_RES / BASE_RES) / (N_LEVELS - 1)))
    tables, levels = [], []
    for lvl in range(N_LEVELS):
        scale = BASE_RES * per_level_scale ** lvl - 1.0       # tcnn grid_scale
        res = int(np.ceil(scale)) + 1
        dense = (res ** 3) <= (1 << LOG2_HASHMAP)
        size = res ** 3 if dense else (1 << LOG2_HASHMAP)
        size = ((size + 7) // 8) * 8                          # tcnn multiple-of-8 pad
        key, sub = jax.random.split(key)
        tables.append(jax.random.uniform(
            sub, (size, F_PER_LEVEL), minval=-1e-4, maxval=1e-4, dtype=jnp.float32))
        levels.append((float(scale), res, dense))
    return tables, tuple(levels)


def hash_grid_encode_t(x, tables, levels):
    """x: (N, 3) in [0, 1) -> (N_LEVELS * F_PER_LEVEL, N) feature-major smoothstep feats."""
    corner_bits = jnp.asarray(CORNER_BITS)                    # (8, 3) uint32
    corner_mask = jnp.asarray(CORNER_BITS.astype(bool))       # (8, 3) bool
    feats = []
    for table, (scale, res, dense) in zip(tables, levels):
        size = table.shape[0]
        pos = x * scale + 0.5
        pos_grid = jnp.floor(pos)
        frac = pos - pos_grid
        pos_grid = pos_grid.astype(jnp.uint32)
        w_hi = frac * frac * (3.0 - 2.0 * frac)               # smoothstep weight
        w_lo = 1.0 - w_hi
        # all 8 corners at once: (N, 8, 3)
        cpos = pos_grid[:, None, :] + corner_bits[None, :, :]
        if dense:
            # clamp boundary corners (no wrap-around aliasing at the domain edge)
            cpos = jnp.minimum(cpos, jnp.uint32(res - 1))
            idx = (cpos[..., 0]
                   + cpos[..., 1] * jnp.uint32(res)
                   + cpos[..., 2] * jnp.uint32(res * res))
        else:
            idx = (cpos[..., 0] * jnp.uint32(HASH_PRIMES[0])
                   ^ (cpos[..., 1] * jnp.uint32(HASH_PRIMES[1]))
                   ^ (cpos[..., 2] * jnp.uint32(HASH_PRIMES[2])))
            idx = idx & jnp.uint32(size - 1)                  # size is a power of two
        idx = idx.astype(jnp.int32)                           # (N, 8)
        w = jnp.where(corner_mask[None, :, :],
                      w_hi[:, None, :], w_lo[:, None, :]).prod(axis=-1)   # (N, 8)
        feats.append(jnp.einsum('nc,ncf->fn', w, table[idx])) # (2, N) feature-major
    return jnp.concatenate(feats, axis=0)                     # (32, N)


# ----------------------------- MLP parameters --------------------------------
def init_mlp_params(key):
    k1, k2, k3 = jax.random.split(key, 3)
    # geometric-init-flavoured, deterministic synthetic weights, stored transposed
    # (output-major) and in bf16 for the MXU; biases stay f32.
    w1t = (jax.random.normal(k1, (N_NEURONS, DIM_IN), jnp.float32)
           * (np.sqrt(2.0) / np.sqrt(N_NEURONS))).astype(jnp.bfloat16)
    b1 = jnp.zeros((N_NEURONS, 1), jnp.float32)
    w2t = (jax.random.normal(k2, (N_NEURONS, N_NEURONS), jnp.float32)
           * (np.sqrt(2.0) / np.sqrt(N_NEURONS))).astype(jnp.bfloat16)
    b2 = jnp.zeros((N_NEURONS, 1), jnp.float32)
    # final layer stored as a row vector in an (8, 64) buffer, row 0 live
    w3_row = (jnp.zeros((8, N_NEURONS), jnp.float32).at[0, :].set(
        jax.random.normal(k3, (N_NEURONS,), jnp.float32)
        * (np.sqrt(np.pi) / np.sqrt(N_NEURONS)))).astype(jnp.bfloat16)
    # b3 = -0.5 from geometric init, with the forward's "+ 1.0" folded in
    # (reference: softplus(mlp(x)[..., 0] + 1.0))
    b3 = jnp.full((1,), -0.5 + 1.0, jnp.float32)
    return w1t, b1, w2t, b2, w3_row, b3


# ----------------------------- forward pass ----------------------------------
def sphere_distance_field(directions, tables, levels, mlp_params):
    """directions: (N, 3) float32 unit vectors -> distance (N,) float32."""
    dir_scaled = directions * 0.49 + 0.49
    # selector is computed by the reference forward but unused for the returned
    # distance (dead code); kept for semantic parity.
    _selector = jnp.all((dir_scaled > 0.0) & (dir_scaled < 1.0),
                        axis=-1).astype(jnp.float32)
    scene_feat_t = hash_grid_encode_t(dir_scaled, tables, levels)       # (32, N)
    x_cat_t = jnp.concatenate([directions.T, scene_feat_t], axis=0)     # (35, N)
    return geo_mlp_pallas(x_cat_t.astype(jnp.bfloat16), mlp_params)


if __name__ == "__main__":
    key = jax.random.PRNGKey(0)
    k_dir, k_tbl, k_mlp = jax.random.split(key, 3)

    N = 256
    d = jax.random.normal(k_dir, (N, 3), jnp.float32)
    directions = d / jnp.linalg.norm(d, axis=-1, keepdims=True)

    tables, levels = init_hash_tables(k_tbl)
    mlp_params = init_mlp_params(k_mlp)

    fwd = jax.jit(lambda dirs, tbls, prms:
                  sphere_distance_field(dirs, tbls, levels, prms))
    dist = fwd(directions, tables, mlp_params)
    jax.block_until_ready(dist)

    assert dist.shape == (N,)
    assert dist.dtype == jnp.float32
    assert bool(jnp.all(jnp.isfinite(dist)))
    assert bool(jnp.all(dist > 0.0))   # softplus output is strictly positive
    print("KERNEL_OK")
</pallas_src>

<mosaic_0001>
module attributes {stable_mosaic.version = 11 : i64} {
  func.func @sdf_mlp_kernel(%arg0: i32, %arg1: memref<35x128xbf16, #tpu.memory_space<vmem>>, %arg2: memref<64x35xbf16, #tpu.memory_space<vmem>>, %arg3: memref<64x1xf32, #tpu.memory_space<vmem>>, %arg4: memref<64x64xbf16, #tpu.memory_space<vmem>>, %arg5: memref<64x1xf32, #tpu.memory_space<vmem>>, %arg6: memref<8x64xbf16, #tpu.memory_space<vmem>>, %arg7: memref<1xf32, #tpu.memory_space<smem>>, %arg8: memref<1x128xf32, #tpu.memory_space<vmem>>) attributes {dimension_semantics = [#tpu.dimension_semantics<parallel>], iteration_bounds = array<i64: 2>, scalar_prefetch = 0 : i64, scratch_operands = 0 : i64, tpu.core_type = #tpu.core_type<tc>, window_params = [{transform_indices = @transform_0, window_bounds = array<i64: 35, 128>}, {pipeline_mode = #tpu.pipeline_mode<synchronous>, transform_indices = @transform_1, window_bounds = array<i64: 64, 35>}, {pipeline_mode = #tpu.pipeline_mode<synchronous>, transform_indices = @transform_2, window_bounds = array<i64: 64, 1>}, {pipeline_mode = #tpu.pipeline_mode<synchronous>, transform_indices = @transform_3, window_bounds = array<i64: 64, 64>}, {pipeline_mode = #tpu.pipeline_mode<synchronous>, transform_indices = @transform_4, window_bounds = array<i64: 64, 1>}, {pipeline_mode = #tpu.pipeline_mode<synchronous>, transform_indices = @transform_5, window_bounds = array<i64: 8, 64>}, {transform_indices = @transform_6, window_bounds = array<i64: 1>}, {transform_indices = @transform_7, window_bounds = array<i64: 1, 128>}]} {
    %c0 = arith.constant 0 : index
    %c0_0 = arith.constant 0 : index
    %0 = vector.load %arg1[%c0, %c0_0] : memref<35x128xbf16, #tpu.memory_space<vmem>>, vector<35x128xbf16>
    %c0_1 = arith.constant 0 : index
    %c0_2 = arith.constant 0 : index
    %1 = vector.load %arg2[%c0_1, %c0_2] : memref<64x35xbf16, #tpu.memory_space<vmem>>, vector<64x35xbf16>
    %cst = arith.constant dense<0.000000e+00> : vector<64x128xf32>
    %2 = tpu.matmul %1, %0, %cst {dimension_numbers = #tpu.dot_dimension_numbers<[1], [0], [0], [1], [0, 0, 1, 1], [], []>} : vector<64x35xbf16>, vector<35x128xbf16>, vector<64x128xf32> -> vector<64x128xf32>
    %c0_3 = arith.constant 0 : index
    %c0_4 = arith.constant 0 : index
    %3 = vector.load %arg3[%c0_3, %c0_4] : memref<64x1xf32, #tpu.memory_space<vmem>>, vector<64x1xf32>
    %4 = vector.broadcast %3 : vector<64x1xf32> to vector<64x128xf32>
    %5 = arith.addf %2, %4 : vector<64x128xf32>
    %cst_5 = arith.constant 0.000000e+00 : f32
    %6 = vector.broadcast %cst_5 : f32 to vector<64x128xf32>
    %7 = arith.maximumf %5, %6 : vector<64x128xf32>
    %8 = arith.truncf %7 : vector<64x128xf32> to vector<64x128xbf16>
    %c0_6 = arith.constant 0 : index
    %c0_7 = arith.constant 0 : index
    %9 = vector.load %arg4[%c0_6, %c0_7] : memref<64x64xbf16, #tpu.memory_space<vmem>>, vector<64x64xbf16>
    %cst_8 = arith.constant dense<0.000000e+00> : vector<64x128xf32>
    %10 = tpu.matmul %9, %8, %cst_8 {dimension_numbers = #tpu.dot_dimension_numbers<[1], [0], [0], [1], [0, 0, 1, 1], [], []>} : vector<64x64xbf16>, vector<64x128xbf16>, vector<64x128xf32> -> vector<64x128xf32>
    %c0_9 = arith.constant 0 : index
    %c0_10 = arith.constant 0 : index
    %11 = vector.load %arg5[%c0_9, %c0_10] : memref<64x1xf32, #tpu.memory_space<vmem>>, vector<64x1xf32>
    %12 = vector.broadcast %11 : vector<64x1xf32> to vector<64x128xf32>
    %13 = arith.addf %10, %12 : vector<64x128xf32>
    %cst_11 = arith.constant 0.000000e+00 : f32
    %14 = vector.broadcast %cst_11 : f32 to vector<64x128xf32>
    %15 = arith.maximumf %13, %14 : vector<64x128xf32>
    %16 = arith.truncf %15 : vector<64x128xf32> to vector<64x128xbf16>
    %c0_12 = arith.constant 0 : index
    %c0_13 = arith.constant 0 : index
    %17 = vector.load %arg6[%c0_12, %c0_13] : memref<8x64xbf16, #tpu.memory_space<vmem>>, vector<8x64xbf16>
    %cst_14 = arith.constant dense<0.000000e+00> : vector<8x128xf32>
    %18 = tpu.matmul %17, %16, %cst_14 {dimension_numbers = #tpu.dot_dimension_numbers<[1], [0], [0], [1], [0, 0, 1, 1], [], []>} : vector<8x64xbf16>, vector<64x128xbf16>, vector<8x128xf32> -> vector<8x128xf32>
    %19 = vector.extract_strided_slice %18 {offsets = [0, 0], sizes = [1, 128], strides = [1, 1]} : vector<8x128xf32> to vector<1x128xf32>
    %c0_15 = arith.constant 0 : index
    %20 = memref.load %arg7[%c0_15] : memref<1xf32, #tpu.memory_space<smem>>
    %21 = vector.broadcast %20 : f32 to vector<1x128xf32>
    %22 = arith.addf %19, %21 : vector<1x128xf32>
    %cst_16 = arith.constant 2.000000e+01 : f32
    %23 = vector.broadcast %cst_16 : f32 to vector<1x128xf32>
    %24 = arith.cmpf ogt, %22, %23 : vector<1x128xf32>
    %cst_17 = arith.constant 2.000000e+01 : f32
    %25 = vector.broadcast %cst_17 : f32 to vector<1x128xf32>
    %26 = arith.minimumf %22, %25 : vector<1x128xf32>
    %27 = math.exp %26 : vector<1x128xf32>
    %28 = math.log1p %27 : vector<1x128xf32>
    %29 = arith.select %24, %22, %28 : vector<1x128xi1>, vector<1x128xf32>
    %c0_18 = arith.constant 0 : index
    %c0_19 = arith.constant 0 : index
    %30 = vector.load %arg8[%c0_18, %c0_19] : memref<1x128xf32, #tpu.memory_space<vmem>>, vector<1x128xf32>
    tpu.vector_store %arg8[%c0_18, %c0_19], %29 {strides = array<i32>} : memref<1x128xf32, #tpu.memory_space<vmem>>, vector<1x128xf32>,
    return
  }
  func.func @transform_0(%arg0: i32) -> (i32, i32) {
    %c0_i32 = arith.constant 0 : i32
    %c0_i32_0 = arith.constant 0 : i32
    return %c0_i32, %arg0 : i32, i32
  }
  func.func @transform_1(%arg0: i32) -> (i32, i32) {
    %c0_i32 = arith.constant 0 : i32
    %c0_i32_0 = arith.constant 0 : i32
    %c0_i32_1 = arith.constant 0 : i32
    return %c0_i32, %c0_i32_0 : i32, i32
  }
  func.func @transform_2(%arg0: i32) -> (i32, i32) {
    %c0_i32 = arith.constant 0 : i32
    %c0_i32_0 = arith.constant 0 : i32
    %c0_i32_1 = arith.constant 0 : i32
    return %c0_i32, %c0_i32_0 : i32, i32
  }
  func.func @transform_3(%arg0: i32) -> (i32, i32) {
    %c0_i32 = arith.constant 0 : i32
    %c0_i32_0 = arith.constant 0 : i32
    %c0_i32_1 = arith.constant 0 : i32
    return %c0_i32, %c0_i32_0 : i32, i32
  }
  func.func @transform_4(%arg0: i32) -> (i32, i32) {
    %c0_i32 = arith.constant 0 : i32
    %c0_i32_0 = arith.constant 0 : i32
    %c0_i32_1 = arith.constant 0 : i32
    return %c0_i32, %c0_i32_0 : i32, i32
  }
  func.func @transform_5(%arg0: i32) -> (i32, i32) {
    %c0_i32 = arith.constant 0 : i32
    %c0_i32_0 = arith.constant 0 : i32
    %c0_i32_1 = arith.constant 0 : i32
    return %c0_i32, %c0_i32_0 : i32, i32
  }
  func.func @transform_6(%arg0: i32) -> i32 {
    %c0_i32 = arith.constant 0 : i32
    %c0_i32_0 = arith.constant 0 : i32
    return %c0_i32 : i32
  }
  func.func @transform_7(%arg0: i32) -> (i32, i32) {
    %c0_i32 = arith.constant 0 : i32
    %c0_i32_0 = arith.constant 0 : i32
    return %c0_i32, %arg0 : i32, i32
  }
}

</mosaic_0001>

<bundles_post_ra>
// kernel: _lambda_.1
= control target key start
LH: loop header
LB: loop body
LE: loop exit
PB: predicated region body
PF: predicated region fallthrough
CT: control target
= control target key end

     0   :  { %s1144_s0 = inlined_call_operand.vmem [shape: bf16[35,256], index: 0, kind: input, shape index: {}]   ;;  %s1145_s1 = inlined_call_operand.vmem [shape: bf16[64,35], index: 1, kind: input, shape index: {}]   ;;  %s1146_s2 = inlined_call_operand.vmem [shape: f32[64,1], index: 2, kind: input, shape index: {}]   ;;  %s1147_s3 = inlined_call_operand.vmem [shape: bf16[64,64], index: 3, kind: input, shape index: {}]   ;;  %s1148_s4 = inlined_call_operand.vmem [shape: f32[64,1], index: 4, kind: input, shape index: {}]   ;;  %s1149_s5 = inlined_call_operand.vmem [shape: bf16[8,64], index: 5, kind: input, shape index: {}]   ;;  %s1150_s6 = inlined_call_operand.<no memory space> [shape: f32[1], index: 6, kind: input, shape index: {}]   ;;  %s1151_s7 = inlined_call_operand.hbm [shape: f32[1,256], index: 7, kind: output, shape index: {}]  }
   0x1   :  { %12 = sst [smem:[#allocation2]] %s1150_s6 }
   0x2   :  { %13 = vsyncpa [#allocation5], 0 }
   0x3   :  { %15 = vsyncpa [#allocation5 + $0x1], 0  ;;  %s965_s26 = smov 0   ;;  %s967_s27 = smov 0  }
   0x4   :  { %s969_s28 = smov 0   ;;  %s971_s29 = smov 0  }
   0x5 LB: > { %s732_s6 = sadd.s32 4294967295, %s918_s29   ;;  %s733_s30 = sadd.s32 4294967294, %s918_s29   ;;  %s918_s29 = sphi %s971_s29, %s1157_s29   ;;  %s914_s28 = sphi %s969_s28, %s1156_s28   ;;  %s910_s27 = sphi %s967_s27, %s1155_s27   ;;  %s906_s26 = sphi %s965_s26, %s1154_s26  }
   0x6   : > { %s988_s8 = sadd.s32 1, %s918_s29   ;;  %s28_s9 = sadd.s32 1, %s914_s28 }
   0x7   : > { %s25_s10 = ssub.s32 %s918_s29, %s988_s8  ;;  %p35_p0 = scmp.ne.s32.totalorder %s914_s28, %s910_s27 }
   0x8   : > { %p26_p1 = scmp.eq.s32.totalorder %s25_s10, 0  ;;  %p36_p2 = scmp.eq.s32.totalorder %s918_s29, 0 }
   0x9   : > { %p191_p3 = scmp.eq.s32.totalorder %s732_s6, 1  ;;  %p196_p4 = scmp.ne.s32.totalorder %s910_s27, %s906_s26 }
   0xa   : > { %s1001_s11 = scalar_select %p26_p1, %s914_s28, %s28_s9  }
   0xb   : > { %p37_p5 = por %p36_p2, %p35_p0  ;;  %p1003_p6 = por %p191_p3, %p35_p0 }
   0xc   : > { %p197_p7 = scmp.eq.s32.totalorder %s733_s30, 1  ;;  %p735_p9 = scmp.ge.s32.totalorder %s918_s29, 2 }
   0xe   : > { %p1007_p8 = por %p197_p7, %p196_p4  ;;  %231 = sbr.rel (%p735_p9) target bundleno = 29 (0x1d), region = 40 }
  0x13   : > { %234 = sbr.rel (!%p37_p5) target bundleno = 29 (0x1d), region = 44  ;;  %s236_s14 = sand.u32 (%p37_p5), 1, %s914_s28  }
  0x14   : > { %s736_s15 = sshll.u32 (%p37_p5), %s918_s29, 2  ;;  %s806_s16 = smul.u32 (%p37_p5), 20, %s236_s14 }
  0x15   : > { %s240_s19 = scalar_lea.vmem (%p37_p5), %s1144_s0, %s736_s15 }
  0x16   : > { %v257_v0 = vld [vmem:[%s240_s19] sm:$0xf] (%p37_p5)  ;;  %v259_v1 = vld [vmem:[%s240_s19 + $0x8] sm:$0xf] (%p37_p5)  ;;  %v261_v2 = vld [vmem:[%s240_s19 + $0x10] sm:$0xf] (%p37_p5) }
  0x17   : > { %s238_s20 = scalar_lea.vmem (%p37_p5), [#allocation3], %s806_s16  ;;  %v263_v3 = vld [vmem:[%s240_s19 + $0x18] sm:$0xf] (%p37_p5)  ;;  %v265_v4 = vld [vmem:[%s240_s19 + $0x20] sm:$0xf] (%p37_p5) }
  0x18   : > { %258 = vst [vmem:[%s238_s20] sm:$0xf] %v257_v0 }
  0x19   : > { %260 = vst [vmem:[%s238_s20 + $0x4] sm:$0xf] %v259_v1 }
  0x1a   : > { %262 = vst [vmem:[%s238_s20 + $0x8] sm:$0xf] %v261_v2 }
  0x1b   : > { %264 = vst [vmem:[%s238_s20 + $0xc] sm:$0xf] %v263_v3 }
  0x1c   : > { %266 = vst [vmem:[%s238_s20 + $0x10] sm:$0xf] %v265_v4 }
  0x1d PF: > { %p737_p10 = scmp.ge.s32.totalorder %s918_s29, 1  ;;  %p299_p11 = scmp.lt.s32.totalorder %s918_s29, 3 }
  0x1f   : > { %p300_p12 = pnand %p737_p10, %p299_p11 }
  0x20   : > { %s1022_s21 = sand.u32 (!%p300_p12), 1, %s910_s27   ;;  %s641_s17 = sld [smem:[#allocation2]] (!%p300_p12) }
  0x21   : > { %303 = sbr.rel (%p300_p12) target bundleno = 594 (0x252), region = 85  ;;  %s668_s20 = scalar_lea.hbm (!%p300_p12), %s1151_s7, %s732_s6 }
  0x22   : > { %s807_s24 = smul.u32 (!%p300_p12), 20, %s1022_s21  ;;  %s335_s22 = scalar_lea.vmem (!%p300_p12), [#allocation4], %s1022_s21 }
  0x23   : > { %s670_s23 = sshll.u32 (!%p300_p12), %s335_s22, 4  ;;  %s660_s25 = scalar_lea.sflag (!%p300_p12), [#allocation5], %s1022_s21  ;;  %s671_s23 = int_to_ptr.vmem [resolvable:$true] %s670_s23 }
  0x24   : > { %s308_s9 = scalar_lea.vmem (!%p300_p12), [#allocation3], %s807_s24  ;;  %s672_s24 = sshll.u32 (!%p300_p12), %s668_s20, 4  ;;  %s673_s24 = int_to_ptr.hbm [resolvable:$true] %s672_s24 }
  0x25   : > { %s870_s30 = sshra.s32 (!%p300_p12), %s673_s24, 4  ;;  %s876_s14 = scalar_lea.hbm (!%p300_p12), %s1151_s7, 2  ;;  %s871_s30 = int_to_ptr.hbm [resolvable:$true] %s870_s30 }
  0x26   : > { %vm446_vm0 = vcmask 1040384   ;;  %v356_v5 = vld [vmem:[%s1146_s2 + $0x30] sm:$0xff]  ;;  %v920_v6 = vmov 0   ;;  %v354_v7 = vld [vmem:[%s1146_s2 + $0x20] sm:$0xff]  ;;  %vm447_vm1 = vcmask 1041408   ;;  %v921_v8 = vmov 65535   ;;  %p877_p2 = scmp.lt.s32.totalorder %s871_s30, %s1151_s7 }
  0x27   : > { %849 = vset.pattern.permute.xlu0 %v920_v6  ;;  %850 = vset.pattern.permute.xlu1 %v920_v6  ;;  %v448_v9 = vsel %vm446_vm0, 4294967295, %v921_v8  ;;  %v341_v10 = vld [vmem:[%s308_s9 + $0x10] sm:$0x3]  ;;  %v357_v14 = vld [vmem:[%s1146_s2 + $0x38] sm:$0xff]  ;;  %v355_v15 = vld [vmem:[%s1146_s2 + $0x28] sm:$0xff]  ;;  %vm433_vm2 = vcmask 285696  }
  0x28   : > { %390 = vperm.xlu0 %849, %v356_v5   ;;  %380 = vperm.xlu1 %850, %v354_v7   ;;  %v427_v11 = vunpack.c.l.b16 %v341_v10  ;;  %v449_v12 = vsel %vm447_vm1, %v448_v9, 0  ;;  %v790_v17 = vld [vmem:[%s308_s9 + $0x8] sm:$0xff]  ;;  %v789_v18 = vld [vmem:[%s308_s9] sm:$0xff]  ;;  %vm570_vm3 = vcmask 523264   ;;  %s872_s9 = scalar_lea.hbm %s871_s30, 1 }
  0x29   : > { %851 = vset.pattern.permute.xlu2 %v920_v6  ;;  %v350_v19 = vld [vmem:[%s1146_s2] sm:$0xff]  ;;  %v351_v20 = vld [vmem:[%s1146_s2 + $0x8] sm:$0xff]  ;;  %v794_v22 = vld [vmem:[%s1145_s1 + $0x18] sm:$0xff]  ;;  %p873_p13 = scmp.ne.s32.totalorder %s871_s30, %s872_s9  ;;  %p878_p3 = scmp.lt.s32.totalorder %s876_s14, %s872_s9 }
  0x2a   : > { %v430_v13 = vpack.c.b16 %v427_v11, %v427_v11  ;;  %v791_v21 = vld [vmem:[%s1145_s1] sm:$0xff]  ;;  %v352_v23 = vld [vmem:[%s1146_s2 + $0x10] sm:$0xff]  ;;  %v509_v24 = vld [vmem:[%s1148_s4 + $0x38] sm:$0xff] }
  0x2b   : > { %v506_v25 = vld [vmem:[%s1148_s4 + $0x20] sm:$0xff]  ;;  %370 = vperm.xlu2 %851, %v352_v23   ;;  %v353_v26 = vld [vmem:[%s1146_s2 + $0x18] sm:$0xff]  ;;  %v504_v27 = vld [vmem:[%s1148_s4 + $0x10] sm:$0xff]  ;;  %p874_p0 = pnand %p873_p13, %p1003_p6  ;;  %p879_p4 = por %p878_p3, %p877_p2 }
  0x2c   : > { %v451_v16 = vand.u32 %v449_v12, %v430_v13  ;;  %v505_v28 = vld [vmem:[%s1148_s4 + $0x18] sm:$0xff]  ;;  %v792_v29 = vld [vmem:[%s1145_s1 + $0x8] sm:$0xff]  ;;  %v508_v30 = vld [vmem:[%s1148_s4 + $0x30] sm:$0xff] }
  0x2d   : > { %v503_v31 = vld [vmem:[%s1148_s4 + $0x8] sm:$0xff]  ;;  %v793_v33 = vld [vmem:[%s1145_s1 + $0x10] sm:$0xff]  ;;  %v502_v34 = vld [vmem:[%s1148_s4] sm:$0xff]  ;;  %p875_p1 = pneg %p874_p0 }
  0x2e   : > { %458 = vmatpush.bf16.msra.mxu0 %v451_v16  ;;  %799 = vmatpush.bf16.msra.mxu1 %v451_v16  ;;  %v507_v32 = vld [vmem:[%s1148_s4 + $0x28] sm:$0xff]  ;;  %v795_v7 = vld [vmem:[%s1147_s3] sm:$0xff]  ;;  %v797_v9 = vld [vmem:[%s1147_s3 + $0x10] sm:$0xff] }
  0x2f   : > { %v796_v8 = vld [vmem:[%s1147_s3 + $0x8] sm:$0xff]  ;;  %v798_v10 = vld [vmem:[%s1147_s3 + $0x18] sm:$0xff]  ;;  %p880_p5 = pnand %p879_p4, %p875_p1 }
  0x30   : > { %395 = vperm.xlu0 %849, %v357_v14   ;;  %385 = vperm.xlu1 %850, %v355_v15  }
  0x32   : > { %459 = vmatpush.bf16.msra.mxu0 %v790_v17  ;;  %800 = vmatpush.bf16.msra.mxu1 %v790_v17 }
  0x33   : > { %375 = vperm.xlu2 %851, %v353_v26  }
  0x36   : > { %460 = vmatpush.bf16.msra.mxu0 %v789_v18  ;;  %801 = vmatpush.bf16.msra.mxu1 %v789_v18 }
  0x38   : > { %360 = vperm.xlu0 %849, %v350_v19   ;;  %365 = vperm.xlu1 %850, %v351_v20  }
  0x39   : > { %762 = vmatmul.msk.bf16.vlgmr.msra.gmra.mxu0 %vm433_vm2, %v791_v21  ;;  %765 = vmatmul.msk.bf16.vlgmr.msra.gmra.mxu1 %vm433_vm2, %v794_v22 }
  0x3b   : > { %542 = vperm.xlu2 %851, %v508_v30  }
  0x40   : > { %547 = vperm.xlu0 %849, %v509_v24   ;;  %532 = vperm.xlu1 %850, %v506_v25  }
  0x43   : > { %537 = vperm.xlu2 %851, %v507_v32  }
  0x48   : > { %522 = vperm.xlu0 %849, %v504_v27   ;;  %527 = vperm.xlu1 %850, %v505_v28  }
  0x49   : > { %763 = vmatmul.msk.bf16.gmra.mxu0 %vm433_vm2, %v792_v29 }
  0x4b   : > { %512 = vperm.xlu2 %851, %v502_v34  }
  0x50   : > { %517 = vperm.xlu0 %849, %v503_v31  }
  0x59   : > { %764 = vmatmul.msk.bf16.gmra.mxu0 %vm433_vm2, %v793_v33 }
  0x85   : > { %v371_v49 = vpop.permute.xlu2 %370 }
  0x8d   : > { %v376_v53 = vpop.permute.xlu2 %375 }
  0x95   : > { %v543_v16 = vpop.permute.xlu2 %542 }
  0x9a   : > { %v391_v35 = vpop.permute.xlu0 %390  ;;  %v381_v47 = vpop.permute.xlu1 %380 }
  0x9d   : > { %v538_v22 = vpop.permute.xlu2 %537 }
  0xa2   : > { %v396_v39 = vpop.permute.xlu0 %395  ;;  %v386_v50 = vpop.permute.xlu1 %385 }
  0xaa   : > { %v366_v57 = vpop.permute.xlu1 %365  ;;  %v361_v61 = vpop.permute.xlu0 %360 }
  0xb2   : > { %v548_v15 = vpop.permute.xlu0 %547  ;;  %v533_v18 = vpop.permute.xlu1 %532 }
  0xb6   : > { %v462_v36 = vpop.f32.mrf.mxu0  ;;  %v477_v37 = vpop.f32.mrf.mxu1 }
  0xb7   : > { %v478_v38 = vadd.f32 %v477_v37, %v391_v35  ;;  %v463_v1 = vadd.f32 %v462_v36, %v361_v61 }
  0xb9   : > { %v488_v42 = vmax.f32 %v478_v38, 0.0  ;;  %v482_v5 = vmax.f32 %v463_v1, 0.0 }
  0xba   : > { %v523_v20 = vpop.permute.xlu0 %522  ;;  %v528_v29 = vpop.permute.xlu1 %527 }
  0xbe   : > { %v464_v40 = vpop.f32.mrf.mxu0  ;;  %v479_v41 = vpop.f32.mrf.mxu1 }
  0xbf   : > { %v480_v43 = vadd.f32 %v479_v41, %v396_v39  ;;  %v465_v62 = vadd.f32 %v464_v40, %v366_v57  ;;  %v513_v40 = vpop.permute.xlu2 %512 }
  0xc1   : > { %v489_v44 = vmax.f32 %v480_v43, 0.0  ;;  %v483_v3 = vmax.f32 %v465_v62, 0.0 }
  0xc2   : > { %v518_v36 = vpop.permute.xlu0 %517 }
  0xc3   : > { %v493_v45 = vpack.c.bf16 %v489_v44, %v488_v42  ;;  %v490_v6 = vpack.c.bf16 %v483_v3, %v482_v5 }
  0xc5   : > { %587 = vmatpush.bf16.msrb.mxu1 %v493_v45  ;;  %802 = vmatpush.bf16.msra.mxu3 %v493_v45 }
  0xc6   : > { %v467_v46 = vpop.f32.mrf.mxu0 }
  0xc7   : > { %v468_v58 = vadd.f32 %v467_v46, %v371_v49 }
  0xc9   : > { %v484_v2 = vmax.f32 %v468_v58, 0.0 }
  0xce   : > { %v469_v48 = vpop.f32.mrf.mxu0 }
  0xcf   : > { %v470_v55 = vadd.f32 %v469_v48, %v376_v53  ;;  %v642_v48 = vstv %s641_s17 }
  0xd1   : > { %v485_v63 = vmax.f32 %v470_v55, 0.0 }
  0xd3   : > { %v491_v4 = vpack.c.bf16 %v485_v63, %v484_v2 }
  0xd6   : > { %v472_v51 = vpop.f32.mrf.mxu0 }
  0xd7   : > { %v473_v52 = vadd.f32 %v472_v51, %v381_v47  ;;  %v624_v47 = vld [vmem:[%s1149_s5] sm:$0xf] }
  0xd9   : > { %v486_v59 = vmax.f32 %v473_v52, 0.0 }
  0xde   : > { %v474_v54 = vpop.f32.mrf.mxu0 }
  0xdf   : > { %v475_v56 = vadd.f32 %v474_v54, %v386_v50 }
  0xe1   : > { %v487_v60 = vmax.f32 %v475_v56, 0.0 }
  0xe3   : > { %v492_v0 = vpack.c.bf16 %v487_v60, %v486_v59 }
  0xe5   : > { %588 = vmatpush.bf16.msrb.mxu1 %v492_v0  ;;  %803 = vmatpush.bf16.msra.mxu3 %v492_v0 }
  0xe9   : > { %589 = vmatpush.bf16.msrb.mxu1 %v491_v4  ;;  %804 = vmatpush.bf16.msra.mxu3 %v491_v4 }
  0xed   : > { %590 = vmatpush.bf16.msrb.mxu1 %v490_v6  ;;  %805 = vmatpush.bf16.msra.mxu3 %v490_v6 }
  0xf0   : > { %782 = vmatmul.msk.bf16.vlgmr.msrb.gmra.mxu1 %vm570_vm3, %v795_v7  ;;  %783 = vmatmul.msk.bf16.vlgmr.msra.gmra.mxu3 %vm570_vm3, %v796_v8 }
 0x100   : > { %784 = vmatmul.msk.bf16.gmra.mxu3 %vm570_vm3, %v797_v9 }
 0x110   : > { %785 = vmatmul.msk.bf16.gmra.mxu3 %vm570_vm3, %v798_v10 }
 0x16d   : > { %v592_v19 = vpop.f32.mrf.mxu1 }
 0x16e   : > { %v593_v41 = vadd.f32 %v592_v19, %v513_v40 }
 0x170   : > { %v612_v45 = vmax.f32 %v593_v41, 0.0 }
 0x173   : > { %v597_v11 = vpop.f32.mrf.mxu3 }
 0x174   : > { %v598_v34 = vadd.f32 %v597_v11, %v523_v20 }
 0x175   : > { %v594_v33 = vpop.f32.mrf.mxu1 }
 0x176   : > { %v595_v37 = vadd.f32 %v594_v33, %v518_v36  ;;  %v614_v42 = vmax.f32 %v598_v34, 0.0 }
 0x178   : > { %v613_v43 = vmax.f32 %v595_v37, 0.0 }
 0x17a   : > { %v620_v46 = vpack.c.bf16 %v613_v43, %v612_v45 }
 0x17b   : > { %v599_v12 = vpop.f32.mrf.mxu3 }
 0x17c   : > { %v600_v30 = vadd.f32 %v599_v12, %v528_v29 }
 0x17e   : > { %v615_v38 = vmax.f32 %v600_v30, 0.0 }
 0x180   : > { %v621_v44 = vpack.c.bf16 %v615_v38, %v614_v42 }
 0x183   : > { %v602_v13 = vpop.f32.mrf.mxu3 }
 0x184   : > { %v603_v26 = vadd.f32 %v602_v13, %v533_v18 }
 0x186   : > { %v616_v35 = vmax.f32 %v603_v26, 0.0 }
 0x18b   : > { %v604_v14 = vpop.f32.mrf.mxu3 }
 0x18c   : > { %v605_v24 = vadd.f32 %v604_v14, %v538_v22 }
 0x18e   : > { %v617_v31 = vmax.f32 %v605_v24, 0.0 }
 0x190   : > { %v622_v39 = vpack.c.bf16 %v617_v31, %v616_v35 }
 0x193   : > { %v607_v17 = vpop.f32.mrf.mxu3 }
 0x194   : > { %v608_v21 = vadd.f32 %v607_v17, %v543_v16 }
 0x196   : > { %v618_v27 = vmax.f32 %v608_v21, 0.0 }
 0x19b   : > { %v609_v23 = vpop.f32.mrf.mxu3 }
 0x19c   : > { %v610_v25 = vadd.f32 %v609_v23, %v548_v15 }
 0x19e   : > { %v619_v28 = vmax.f32 %v610_v25, 0.0 }
 0x1a0   : > { %v623_v32 = vpack.c.bf16 %v619_v28, %v618_v27 }
 0x1a2   : > { %632 = vmatpush.bf16.msra.mxu2 %v623_v32 }
 0x1a6   : > { %633 = vmatpush.bf16.msra.mxu2 %v622_v39 }
 0x1aa   : > { %634 = vmatpush.bf16.msra.mxu2 %v621_v44 }
 0x1ae   : > { %635 = vmatpush.bf16.msra.mxu2 %v620_v46 }
 0x1b1   : > { %786 = vmatmul.msk.bf16.vlgmr.msra.gmra.mxu2 %vm570_vm3, %v624_v47 }
 0x234   : > { %v637_v49 = vpop.f32.mrf.mxu2 }
 0x235   : > { %v643_v50 = vadd.f32 %v642_v48, %v637_v49 }
 0x237   : > { %v645_v51 = vmin.f32 %v643_v50, 20.0  ;;  %vm644_vm5 = vcmp.gt.f32.partialorder %v643_v50, 20.0 }
 0x239   : > { %v646_v52 = vmul.f32 1.442695, %v645_v51 }
 0x23b   : > { %852 = vpow2.f32 %v646_v52 }
 0x23c   : > { %v639_v53 = vpop.f32.mrf.mxu2 }
 0x241   : > { %v853_v54 = vpop.eup %852 }
 0x242   : > { %v648_v55 = vadd.f32 1.0, %v853_v54  ;;  %v651_v56 = vmul.f32 -0.5, %v853_v54  ;;  %v654_v58 = vand.u32 2147483647, %v853_v54 }
 0x244   : > { %854 = vlog2.f32 %v648_v55  ;;  %v652_v57 = vadd.f32 1.0, %v651_v56  ;;  %vm655_vm4 = vcmp.lt.f32.partialorder %v654_v58, 0.0004427343 }
 0x246   : > { %v653_v61 = vmul.f32 %v853_v54, %v652_v57 }
 0x24a   : > { %v855_v59 = vpop.eup %854 }
 0x24b   : > { %v650_v60 = vmul.f32 0.6931472, %v855_v59 }
 0x24d   : > { %v656_v62 = vsel %vm655_vm4, %v653_v61, %v650_v60 }
 0x24e   : > { %v657_v63 = vsel %vm644_vm5, %v643_v50, %v656_v62 }
 0x24f   : > { %658 = vst [vmem:[%s335_s22] sm:$0x1] %v657_v63 }
 0x250   : > { %883 = shalt.err (!%p880_p5)
}
 0x251   : > { %808 = dma.vmem_to_hbm [thread:$0]  (%p1003_p6), %s671_s23, 16, %s673_s24, %s660_s25  }
 0x252 PF: > { %s684_s21 = sand.u32 1, %s906_s26   ;;  %p811_p7 = pnand %p735_p9, %p1007_p8 }
 0x253   : > { %s685_s17 = scalar_lea.sflag [#allocation5], %s684_s21 }
 0x254   : > { %p812_p10 = pneg %p811_p7 }
 0x256   : > { %901 = dma.done.wait (%p812_p10), %s685_s17, 16  }
 0x257   : > { %903 = vsyncadd (%p812_p10), %s685_s17, 4294967280  ;;  %p18_p11 = scmp.ge.s32.totalorder %s988_s8, 4   ;;  %s1154_s26 = smov %s910_s27 }
 0x258   : > { %s1155_s27 = smov %s914_s28  ;;  %s1156_s28 = smov %s1001_s11 }
 0x259   : > { %s1157_s29 = smov %s988_s8  ;;  %20 = sbr.rel (!%p18_p11) target bundleno = 5 (0x5), region = 129 }
 0x25e   :  { %690 = vsyncpa [#allocation5], 1 }
 0x25f   :  { %692 = vsyncpa [#allocation5 + $0x1], 1 }

</bundles_post_ra>
